<compile_context>
chip_gen: v5e
topology: v5e:2x2
jax: 0.10.0
libtpu: 0.0.40
codegen_flags: <defaults>
</compile_context>

<pallas_src>
import functools

import jax
import jax.numpy as jnp
from jax.experimental import pallas as pl
from jax.experimental.pallas import tpu as pltpu

_LANES = 128            # boxes along the fast (lane) axis
_MAX_SUBLANES = 512     # sublanes per grid step -> up to 65536 boxes / step
_MIN_GRID_STEPS = 4     # target >=4 grid steps for megacore + pipelining


def _load_gauss(ref):
    """xy_wh_r_2_xy_sigma on SoA component planes (double-angle form).

    Returns (x, y, s11, s12, s22, sdet) where sigma = [[s11,s12],[s12,s22]]
    and sdet = sqrt(det(sigma)) = w*h/4 exactly (rotation preserves det).
    """
    x = ref[0].astype(jnp.float32)
    y = ref[1].astype(jnp.float32)
    w = jnp.clip(ref[2].astype(jnp.float32), 1e-7, 1e7)
    h = jnp.clip(ref[3].astype(jnp.float32), 1e-7, 1e7)
    r = ref[4].astype(jnp.float32)

    a = 0.25 * w * w            # (w/2)^2
    b = 0.25 * h * h            # (h/2)^2
    half_sum = 0.5 * (a + b)
    half_dif = 0.5 * (a - b)
    two_r = r + r
    cos2 = jnp.cos(two_r)
    sin2 = jnp.sin(two_r)
    s11 = half_sum + half_dif * cos2
    s12 = half_dif * sin2
    s22 = half_sum - half_dif * cos2
    sdet = 0.25 * (w * h)       # sqrt(det(sigma)), always > 0
    return x, y, s11, s12, s22, sdet


def _one_minus_inv(denom, approx):
    """1 - 1/denom; approx path = EUP reciprocal + one Newton refinement."""
    if approx:
        r = pl.reciprocal(denom, approx=True)
        r = r * (2.0 - denom * r)      # one Newton step -> ~f32 accuracy
        return 1.0 - r
    return 1.0 - 1.0 / denom


def _gd_loss_kernel(pred_ref, tgt_ref, out_ref, *, loss_type, fun, tau,
                    loss_weight, approx_recip):
    # pred_ref / tgt_ref blocks: (5, TS, 128); plane c = component c of TS*128 boxes.
    px, py, p11, p12, p22, sdet_p = _load_gauss(pred_ref)
    tx, ty, t11, t12, t22, sdet_t = _load_gauss(tgt_ref)

    dx = px - tx
    dy = py - ty

    if loss_type == 'kld':
        det_t = sdet_t * sdet_t
        # delta^T sigma_t^{-1} delta and tr(sigma_t^{-1} sigma_p): numerators
        # first, one shared divide by det_t.
        qnum = dx * dx * t22 - 2.0 * dx * dy * t12 + dy * dy * t11
        trnum = p11 * t22 - 2.0 * p12 * t12 + p22 * t11
        log_ratio = 2.0 * (jnp.log(sdet_t) - jnp.log(sdet_p))  # log(det_t/det_p)
        dis = (qnum + trnum) / det_t + log_ratio - 2.0
        dis = jnp.maximum(dis, 1e-6)
        if fun == 'sqrt':
            loss = _one_minus_inv(tau + jnp.sqrt(dis), approx_recip)
        else:  # kld_loss applies log1p for both 'log1p' and ''
            loss = _one_minus_inv(tau + jnp.log1p(dis), approx_recip)

    elif loss_type == 'bcd':
        m11 = 0.5 * (p11 + t11)
        m12 = 0.5 * (p12 + t12)
        m22 = 0.5 * (p22 + t22)
        det_m = m11 * m22 - m12 * m12
        # log(det_m / sqrt(det_t*det_p)); sqrt(det_t*det_p) = sdet_t*sdet_p exactly.
        term1 = jnp.log(det_m) - jnp.log(sdet_p * sdet_t)
        qnum = dx * dx * m22 - 2.0 * dx * dy * m12 + dy * dy * m11
        dis = 0.5 * term1 + 0.125 * (qnum / det_m)
        dis = jnp.maximum(dis, 1e-6)
        if fun == 'sqrt':
            loss = _one_minus_inv(tau + jnp.sqrt(dis), approx_recip)
        elif fun == 'log1p':
            loss = _one_minus_inv(tau + jnp.log1p(dis), approx_recip)
        else:
            loss = _one_minus_inv(tau + dis, approx_recip)

    elif loss_type == 'gwd':
        xy_distance = dx * dx + dy * dy
        whr_distance = (p11 + p22) + (t11 + t22)
        # tr(sigma_p @ sigma_t) for symmetric 2x2
        t_tr = p11 * t11 + 2.0 * p12 * t12 + p22 * t22
        t_det_sqrt = sdet_p * sdet_t          # = sqrt(det_p*det_t) >= 0 exactly
        whr_distance = whr_distance - 2.0 * jnp.sqrt(
            jnp.maximum(t_tr + 2.0 * t_det_sqrt, 0.0))
        dis = jnp.maximum(xy_distance + whr_distance, 1e-6)
        if fun == 'sqrt':
            loss = _one_minus_inv(tau + jnp.sqrt(dis), approx_recip)
        elif fun == 'log1p':
            loss = _one_minus_inv(tau + jnp.log1p(dis), approx_recip)
        else:
            scale = 2.0 * jnp.maximum(jnp.sqrt(jnp.sqrt(t_det_sqrt)), 1e-7)
            loss = jnp.log1p(jnp.sqrt(dis) / scale)
    else:
        raise ValueError(f'unknown loss_type {loss_type}')

    out_ref[...] = (loss * loss_weight).astype(out_ref.dtype)


def gd_loss_v1(pred, target, *, loss_type='kld', fun='sqrt', tau=1.0,
               loss_weight=1.0, approx_reciprocal=True):
    """Pallas implementation of GDLoss_v1.forward (weight=None path).

    Args:
        pred:   (N, 5) float array of [x, y, w, h, r] predicted rboxes.
        target: (N, 5) float array of gt rboxes.
    Returns:
        (N, 1) loss for 'kld'/'bcd', (N,) loss for 'gwd' (matches PyTorch shapes),
        in the input dtype.
    """
    assert pred.shape == target.shape and pred.shape[-1] == 5
    n = pred.shape[0]
    out_dtype = pred.dtype
    if n == 0:
        shape = (0, 1) if loss_type in ('kld', 'bcd') else (0,)
        return jnp.zeros(shape, out_dtype)

    # --- Tiling: boxes on the lane axis (128 wide); TS sublanes per grid step.
    # Lane-block count is bucketed to the next power of two so block shapes
    # (and therefore Mosaic compiles) do not depend on the exact N.
    n_lane_blocks = -(-n // _LANES)                       # ceil(N / 128)
    nb = 1 << (n_lane_blocks - 1).bit_length()            # power-of-2 bucket
    if nb <= 8:
        ts = nb                                            # single step (<=1024 boxes)
    else:
        # >= 8 (sublane-aligned), <= 512, and >= _MIN_GRID_STEPS grid steps.
        ts = max(8, min(_MAX_SUBLANES, nb // _MIN_GRID_STEPS))
    grid_steps = nb // ts                                  # nb, ts both powers of 2
    n_pad = nb * _LANES

    def to_soa(x):
        # Single pad -> transpose -> (free) reshape relayout; stays in the
        # input dtype (bf16 callers DMA half the bytes, cast happens in-kernel).
        # Pad value 1.0 gives identical finite unit boxes for pred/target in
        # the padded lanes; their loss is sliced off below.
        x = jnp.pad(x, ((0, n_pad - n), (0, 0)), constant_values=1.0)
        return x.T.reshape(5, nb, _LANES)

    pred_soa = to_soa(pred)
    tgt_soa = to_soa(target)

    kernel = functools.partial(
        _gd_loss_kernel, loss_type=loss_type, fun=fun, tau=float(tau),
        loss_weight=float(loss_weight), approx_recip=bool(approx_reciprocal))

    itemsize = jnp.dtype(out_dtype).itemsize
    cost = pl.CostEstimate(flops=70 * n_pad, transcendentals=8 * n_pad,
                           bytes_accessed=11 * itemsize * n_pad)

    out = pl.pallas_call(
        kernel,
        out_shape=jax.ShapeDtypeStruct((nb, _LANES), out_dtype),
        grid_spec=pltpu.PrefetchScalarGridSpec(
            num_scalar_prefetch=0,
            grid=(grid_steps,),
            in_specs=[
                pl.BlockSpec((5, ts, _LANES), lambda i: (0, i, 0)),
                pl.BlockSpec((5, ts, _LANES), lambda i: (0, i, 0)),
            ],
            out_specs=pl.BlockSpec((ts, _LANES), lambda i: (i, 0)),
        ),
        compiler_params=pltpu.CompilerParams(
            dimension_semantics=("parallel",)),
        cost_estimate=cost,
    )(pred_soa, tgt_soa)

    loss = out.reshape(n_pad)[:n]
    if loss_type in ('kld', 'bcd'):
        return loss.reshape(n, 1)
    return loss


# ---------------- pure-JAX reference (mirrors the PyTorch code) ----------------
def _ref_preprocess(xywhr):
    xy = xywhr[..., :2]
    wh = jnp.clip(xywhr[..., 2:4], 1e-7, 1e7)
    r = xywhr[..., 4]
    cos_r, sin_r = jnp.cos(r), jnp.sin(r)
    R = jnp.stack([cos_r, -sin_r, sin_r, cos_r], axis=-1).reshape(-1, 2, 2)
    S = 0.5 * jnp.stack([jnp.stack([wh[:, 0], jnp.zeros_like(wh[:, 0])], -1),
                         jnp.stack([jnp.zeros_like(wh[:, 1]), wh[:, 1]], -1)], -2)
    sigma = R @ (S * S) @ jnp.swapaxes(R, -1, -2)
    return xy, sigma


def _ref_kld(pred, target, fun='sqrt', tau=1.0):
    (mu_p, sig_p), (mu_t, sig_t) = pred, target
    delta = (mu_p - mu_t)[..., None]
    sig_t_inv = jnp.linalg.inv(sig_t)
    term1 = (jnp.swapaxes(delta, -1, -2) @ sig_t_inv @ delta)[..., 0]
    term2 = jnp.trace(sig_t_inv @ sig_p, axis1=-2, axis2=-1)[:, None] + \
        jnp.log(jnp.linalg.det(sig_t) / jnp.linalg.det(sig_p)).reshape(-1, 1)
    dis = jnp.maximum(term1 + term2 - 2.0, 1e-6)
    if fun == 'sqrt':
        return 1.0 - 1.0 / (tau + jnp.sqrt(dis))
    return 1.0 - 1.0 / (tau + jnp.log1p(dis))


def _ref_gwd(pred, target, fun='sqrt', tau=2.0):
    (mu_p, sig_p), (mu_t, sig_t) = pred, target
    xy_d = jnp.sum((mu_p - mu_t) ** 2, axis=-1)
    whr = jnp.trace(sig_p, axis1=-2, axis2=-1) + jnp.trace(sig_t, axis1=-2, axis2=-1)
    t_tr = jnp.trace(sig_p @ sig_t, axis1=-2, axis2=-1)
    t_det = jnp.sqrt(jnp.maximum(jnp.linalg.det(sig_p) * jnp.linalg.det(sig_t), 0.0))
    whr = whr - 2.0 * jnp.sqrt(jnp.maximum(t_tr + 2.0 * t_det, 0.0))
    dis = jnp.maximum(xy_d + whr, 1e-6)
    if fun == 'sqrt':
        return 1.0 - 1.0 / (tau + jnp.sqrt(dis))
    if fun == 'log1p':
        return 1.0 - 1.0 / (tau + jnp.log1p(dis))
    scale = 2.0 * jnp.maximum(jnp.sqrt(jnp.sqrt(t_det)), 1e-7)
    return jnp.log1p(jnp.sqrt(dis) / scale)


def _ref_bcd(pred, target, fun='log1p', tau=1.0):
    (mu_p, sig_p), (mu_t, sig_t) = pred, target
    delta = (mu_p - mu_t)[..., None]
    sig = 0.5 * (sig_p + sig_t)
    sig_inv = jnp.linalg.inv(sig)
    term1 = jnp.log(jnp.linalg.det(sig) /
                    jnp.sqrt(jnp.linalg.det(sig_t @ sig_p))).reshape(-1, 1)
    term2 = (jnp.swapaxes(delta, -1, -2) @ sig_inv @ delta)[..., 0]
    dis = jnp.maximum(0.5 * term1 + 0.125 * term2, 1e-6)
    if fun == 'sqrt':
        return 1.0 - 1.0 / (tau + jnp.sqrt(dis))
    if fun == 'log1p':
        return 1.0 - 1.0 / (tau + jnp.log1p(dis))
    return 1.0 - 1.0 / (tau + dis)


if __name__ == "__main__":
    key = jax.random.PRNGKey(0)

    def make_boxes(k, n):
        ka, kb, kc = jax.random.split(k, 3)
        xy = jax.random.uniform(ka, (n, 2), jnp.float32) * 64.0
        wh = jax.random.uniform(kb, (n, 2), jnp.float32) * 28.0 + 4.0
        r = (jax.random.uniform(kc, (n, 1), jnp.float32) * 2.0 - 1.0) * jnp.pi
        return jnp.concatenate([xy, wh, r], axis=-1)

    pred = target = None
    # N=64 (single lane block) and N=300 (ragged tail, bucketed to 4 blocks).
    for n in (64, 300):
        kp, kt, key = jax.random.split(key, 3)
        pred = make_boxes(kp, n)
        target = make_boxes(kt, n)

        # GDLoss_v1(loss_type=..., fun=..., tau=1.0, loss_weight=1.0).forward(pred, target)
        loss_kld = gd_loss_v1(pred, target, loss_type='kld', fun='sqrt', tau=1.0)
        loss_gwd = gd_loss_v1(pred, target, loss_type='gwd', fun='sqrt', tau=1.0)
        loss_gwd_raw = gd_loss_v1(pred, target, loss_type='gwd', fun='', tau=1.0)
        loss_bcd = gd_loss_v1(pred, target, loss_type='bcd', fun='log1p', tau=1.0)
        jax.block_until_ready((loss_kld, loss_gwd, loss_gwd_raw, loss_bcd))

        # Verify against the pure-JAX mirror of the PyTorch math.
        pg, tg = _ref_preprocess(pred), _ref_preprocess(target)
        ref_kld = _ref_kld(pg, tg, fun='sqrt', tau=1.0)
        ref_gwd = _ref_gwd(pg, tg, fun='sqrt', tau=1.0)
        ref_gwd_raw = _ref_gwd(pg, tg, fun='', tau=1.0)
        ref_bcd = _ref_bcd(pg, tg, fun='log1p', tau=1.0)

        assert loss_kld.shape == (n, 1) and loss_gwd.shape == (n,) and loss_bcd.shape == (n, 1)
        assert jnp.allclose(loss_kld, ref_kld, rtol=1e-4, atol=1e-5)
        assert jnp.allclose(loss_gwd, ref_gwd, rtol=1e-4, atol=1e-5)
        assert jnp.allclose(loss_gwd_raw, ref_gwd_raw, rtol=1e-4, atol=1e-4)
        assert jnp.allclose(loss_bcd, ref_bcd, rtol=1e-4, atol=1e-5)

        # Exact-divide path (approx_reciprocal=False) should also match.
        loss_kld_exact = gd_loss_v1(pred, target, loss_type='kld', fun='sqrt',
                                    tau=1.0, approx_reciprocal=False)
        jax.block_until_ready(loss_kld_exact)
        assert jnp.allclose(loss_kld_exact, ref_kld, rtol=1e-4, atol=1e-5)

    # bf16 ingestion smoke test: inputs DMAed at half width, cast inside kernel,
    # output returned in the input dtype.
    pred_bf = pred.astype(jnp.bfloat16)
    tgt_bf = target.astype(jnp.bfloat16)
    loss_bf = gd_loss_v1(pred_bf, tgt_bf, loss_type='kld', fun='sqrt', tau=1.0)
    jax.block_until_ready(loss_bf)
    assert loss_bf.dtype == jnp.bfloat16
    assert bool(jnp.all(jnp.isfinite(loss_bf.astype(jnp.float32))))

    print("KERNEL_OK")
</pallas_src>

<mosaic_0001>
module attributes {stable_mosaic.version = 11 : i64} {
  func.func @_gd_loss_kernel(%arg0: i32, %arg1: memref<5x1x128xf32, #tpu.memory_space<vmem>>, %arg2: memref<5x1x128xf32, #tpu.memory_space<vmem>>, %arg3: memref<1x128xf32, #tpu.memory_space<vmem>>) attributes {dimension_semantics = [#tpu.dimension_semantics<parallel>], iteration_bounds = array<i64: 1>, scalar_prefetch = 0 : i64, scratch_operands = 0 : i64, tpu.core_type = #tpu.core_type<tc>, window_params = [{transform_indices = @transform_0, window_bounds = array<i64: 5, 1, 128>}, {transform_indices = @transform_1, window_bounds = array<i64: 5, 1, 128>}, {transform_indices = @transform_2, window_bounds = array<i64: 1, 128>}]} {
    %c0 = arith.constant 0 : index
    %c0_0 = arith.constant 0 : index
    %c0_1 = arith.constant 0 : index
    %0 = vector.load %arg1[%c0, %c0_0, %c0_1] : memref<5x1x128xf32, #tpu.memory_space<vmem>>, vector<1x1x128xf32>
    %1 = vector.shape_cast %0 : vector<1x1x128xf32> to vector<1x128xf32>
    %c1 = arith.constant 1 : index
    %c0_2 = arith.constant 0 : index
    %c0_3 = arith.constant 0 : index
    %2 = vector.load %arg1[%c1, %c0_2, %c0_3] : memref<5x1x128xf32, #tpu.memory_space<vmem>>, vector<1x1x128xf32>
    %3 = vector.shape_cast %2 : vector<1x1x128xf32> to vector<1x128xf32>
    %c2 = arith.constant 2 : index
    %c0_4 = arith.constant 0 : index
    %c0_5 = arith.constant 0 : index
    %4 = vector.load %arg1[%c2, %c0_4, %c0_5] : memref<5x1x128xf32, #tpu.memory_space<vmem>>, vector<1x1x128xf32>
    %5 = vector.shape_cast %4 : vector<1x1x128xf32> to vector<1x128xf32>
    %cst = arith.constant 1.000000e-07 : f32
    %cst_6 = arith.constant 1.000000e+07 : f32
    %6 = vector.broadcast %cst : f32 to vector<1x128xf32>
    %7 = arith.maximumf %6, %5 : vector<1x128xf32>
    %8 = vector.broadcast %cst_6 : f32 to vector<1x128xf32>
    %9 = arith.minimumf %8, %7 : vector<1x128xf32>
    %c3 = arith.constant 3 : index
    %c0_7 = arith.constant 0 : index
    %c0_8 = arith.constant 0 : index
    %10 = vector.load %arg1[%c3, %c0_7, %c0_8] : memref<5x1x128xf32, #tpu.memory_space<vmem>>, vector<1x1x128xf32>
    %11 = vector.shape_cast %10 : vector<1x1x128xf32> to vector<1x128xf32>
    %cst_9 = arith.constant 1.000000e-07 : f32
    %cst_10 = arith.constant 1.000000e+07 : f32
    %12 = vector.broadcast %cst_9 : f32 to vector<1x128xf32>
    %13 = arith.maximumf %12, %11 : vector<1x128xf32>
    %14 = vector.broadcast %cst_10 : f32 to vector<1x128xf32>
    %15 = arith.minimumf %14, %13 : vector<1x128xf32>
    %c4 = arith.constant 4 : index
    %c0_11 = arith.constant 0 : index
    %c0_12 = arith.constant 0 : index
    %16 = vector.load %arg1[%c4, %c0_11, %c0_12] : memref<5x1x128xf32, #tpu.memory_space<vmem>>, vector<1x1x128xf32>
    %17 = vector.shape_cast %16 : vector<1x1x128xf32> to vector<1x128xf32>
    %cst_13 = arith.constant 2.500000e-01 : f32
    %18 = vector.broadcast %cst_13 : f32 to vector<1x128xf32>
    %19 = arith.mulf %18, %9 : vector<1x128xf32>
    %20 = arith.mulf %19, %9 : vector<1x128xf32>
    %cst_14 = arith.constant 2.500000e-01 : f32
    %21 = vector.broadcast %cst_14 : f32 to vector<1x128xf32>
    %22 = arith.mulf %21, %15 : vector<1x128xf32>
    %23 = arith.mulf %22, %15 : vector<1x128xf32>
    %24 = arith.addf %20, %23 : vector<1x128xf32>
    %cst_15 = arith.constant 5.000000e-01 : f32
    %25 = vector.broadcast %cst_15 : f32 to vector<1x128xf32>
    %26 = arith.mulf %25, %24 : vector<1x128xf32>
    %27 = arith.subf %20, %23 : vector<1x128xf32>
    %cst_16 = arith.constant 5.000000e-01 : f32
    %28 = vector.broadcast %cst_16 : f32 to vector<1x128xf32>
    %29 = arith.mulf %28, %27 : vector<1x128xf32>
    %30 = arith.addf %17, %17 : vector<1x128xf32>
    %31 = math.cos %30 : vector<1x128xf32>
    %32 = math.sin %30 : vector<1x128xf32>
    %33 = arith.mulf %29, %31 : vector<1x128xf32>
    %34 = arith.addf %26, %33 : vector<1x128xf32>
    %35 = arith.mulf %29, %32 : vector<1x128xf32>
    %36 = arith.mulf %29, %31 : vector<1x128xf32>
    %37 = arith.subf %26, %36 : vector<1x128xf32>
    %38 = arith.mulf %9, %15 : vector<1x128xf32>
    %cst_17 = arith.constant 2.500000e-01 : f32
    %39 = vector.broadcast %cst_17 : f32 to vector<1x128xf32>
    %40 = arith.mulf %39, %38 : vector<1x128xf32>
    %c0_18 = arith.constant 0 : index
    %c0_19 = arith.constant 0 : index
    %c0_20 = arith.constant 0 : index
    %41 = vector.load %arg2[%c0_18, %c0_19, %c0_20] : memref<5x1x128xf32, #tpu.memory_space<vmem>>, vector<1x1x128xf32>
    %42 = vector.shape_cast %41 : vector<1x1x128xf32> to vector<1x128xf32>
    %c1_21 = arith.constant 1 : index
    %c0_22 = arith.constant 0 : index
    %c0_23 = arith.constant 0 : index
    %43 = vector.load %arg2[%c1_21, %c0_22, %c0_23] : memref<5x1x128xf32, #tpu.memory_space<vmem>>, vector<1x1x128xf32>
    %44 = vector.shape_cast %43 : vector<1x1x128xf32> to vector<1x128xf32>
    %c2_24 = arith.constant 2 : index
    %c0_25 = arith.constant 0 : index
    %c0_26 = arith.constant 0 : index
    %45 = vector.load %arg2[%c2_24, %c0_25, %c0_26] : memref<5x1x128xf32, #tpu.memory_space<vmem>>, vector<1x1x128xf32>
    %46 = vector.shape_cast %45 : vector<1x1x128xf32> to vector<1x128xf32>
    %cst_27 = arith.constant 1.000000e-07 : f32
    %cst_28 = arith.constant 1.000000e+07 : f32
    %47 = vector.broadcast %cst_27 : f32 to vector<1x128xf32>
    %48 = arith.maximumf %47, %46 : vector<1x128xf32>
    %49 = vector.broadcast %cst_28 : f32 to vector<1x128xf32>
    %50 = arith.minimumf %49, %48 : vector<1x128xf32>
    %c3_29 = arith.constant 3 : index
    %c0_30 = arith.constant 0 : index
    %c0_31 = arith.constant 0 : index
    %51 = vector.load %arg2[%c3_29, %c0_30, %c0_31] : memref<5x1x128xf32, #tpu.memory_space<vmem>>, vector<1x1x128xf32>
    %52 = vector.shape_cast %51 : vector<1x1x128xf32> to vector<1x128xf32>
    %cst_32 = arith.constant 1.000000e-07 : f32
    %cst_33 = arith.constant 1.000000e+07 : f32
    %53 = vector.broadcast %cst_32 : f32 to vector<1x128xf32>
    %54 = arith.maximumf %53, %52 : vector<1x128xf32>
    %55 = vector.broadcast %cst_33 : f32 to vector<1x128xf32>
    %56 = arith.minimumf %55, %54 : vector<1x128xf32>
    %c4_34 = arith.constant 4 : index
    %c0_35 = arith.constant 0 : index
    %c0_36 = arith.constant 0 : index
    %57 = vector.load %arg2[%c4_34, %c0_35, %c0_36] : memref<5x1x128xf32, #tpu.memory_space<vmem>>, vector<1x1x128xf32>
    %58 = vector.shape_cast %57 : vector<1x1x128xf32> to vector<1x128xf32>
    %cst_37 = arith.constant 2.500000e-01 : f32
    %59 = vector.broadcast %cst_37 : f32 to vector<1x128xf32>
    %60 = arith.mulf %59, %50 : vector<1x128xf32>
    %61 = arith.mulf %60, %50 : vector<1x128xf32>
    %cst_38 = arith.constant 2.500000e-01 : f32
    %62 = vector.broadcast %cst_38 : f32 to vector<1x128xf32>
    %63 = arith.mulf %62, %56 : vector<1x128xf32>
    %64 = arith.mulf %63, %56 : vector<1x128xf32>
    %65 = arith.addf %61, %64 : vector<1x128xf32>
    %cst_39 = arith.constant 5.000000e-01 : f32
    %66 = vector.broadcast %cst_39 : f32 to vector<1x128xf32>
    %67 = arith.mulf %66, %65 : vector<1x128xf32>
    %68 = arith.subf %61, %64 : vector<1x128xf32>
    %cst_40 = arith.constant 5.000000e-01 : f32
    %69 = vector.broadcast %cst_40 : f32 to vector<1x128xf32>
    %70 = arith.mulf %69, %68 : vector<1x128xf32>
    %71 = arith.addf %58, %58 : vector<1x128xf32>
    %72 = math.cos %71 : vector<1x128xf32>
    %73 = math.sin %71 : vector<1x128xf32>
    %74 = arith.mulf %70, %72 : vector<1x128xf32>
    %75 = arith.addf %67, %74 : vector<1x128xf32>
    %76 = arith.mulf %70, %73 : vector<1x128xf32>
    %77 = arith.mulf %70, %72 : vector<1x128xf32>
    %78 = arith.subf %67, %77 : vector<1x128xf32>
    %79 = arith.mulf %50, %56 : vector<1x128xf32>
    %cst_41 = arith.constant 2.500000e-01 : f32
    %80 = vector.broadcast %cst_41 : f32 to vector<1x128xf32>
    %81 = arith.mulf %80, %79 : vector<1x128xf32>
    %82 = arith.subf %1, %42 : vector<1x128xf32>
    %83 = arith.subf %3, %44 : vector<1x128xf32>
    %84 = arith.mulf %81, %81 : vector<1x128xf32>
    %85 = arith.mulf %82, %82 : vector<1x128xf32>
    %86 = arith.mulf %85, %78 : vector<1x128xf32>
    %cst_42 = arith.constant 2.000000e+00 : f32
    %87 = vector.broadcast %cst_42 : f32 to vector<1x128xf32>
    %88 = arith.mulf %87, %82 : vector<1x128xf32>
    %89 = arith.mulf %88, %83 : vector<1x128xf32>
    %90 = arith.mulf %89, %76 : vector<1x128xf32>
    %91 = arith.subf %86, %90 : vector<1x128xf32>
    %92 = arith.mulf %83, %83 : vector<1x128xf32>
    %93 = arith.mulf %92, %75 : vector<1x128xf32>
    %94 = arith.addf %91, %93 : vector<1x128xf32>
    %95 = arith.mulf %34, %78 : vector<1x128xf32>
    %cst_43 = arith.constant 2.000000e+00 : f32
    %96 = vector.broadcast %cst_43 : f32 to vector<1x128xf32>
    %97 = arith.mulf %96, %35 : vector<1x128xf32>
    %98 = arith.mulf %97, %76 : vector<1x128xf32>
    %99 = arith.subf %95, %98 : vector<1x128xf32>
    %100 = arith.mulf %37, %75 : vector<1x128xf32>
    %101 = arith.addf %99, %100 : vector<1x128xf32>
    %102 = math.log %81 : vector<1x128xf32>
    %103 = math.log %40 : vector<1x128xf32>
    %104 = arith.subf %102, %103 : vector<1x128xf32>
    %cst_44 = arith.constant 2.000000e+00 : f32
    %105 = vector.broadcast %cst_44 : f32 to vector<1x128xf32>
    %106 = arith.mulf %105, %104 : vector<1x128xf32>
    %107 = arith.addf %94, %101 : vector<1x128xf32>
    %108 = arith.divf %107, %84 : vector<1x128xf32>
    %109 = arith.addf %108, %106 : vector<1x128xf32>
    %cst_45 = arith.constant 2.000000e+00 : f32
    %110 = vector.broadcast %cst_45 : f32 to vector<1x128xf32>
    %111 = arith.subf %109, %110 : vector<1x128xf32>
    %cst_46 = arith.constant 9.99999997E-7 : f32
    %112 = vector.broadcast %cst_46 : f32 to vector<1x128xf32>
    %113 = arith.maximumf %111, %112 : vector<1x128xf32>
    %114 = math.sqrt %113 : vector<1x128xf32>
    %cst_47 = arith.constant 1.000000e+00 : f32
    %115 = vector.broadcast %cst_47 : f32 to vector<1x128xf32>
    %116 = arith.addf %115, %114 : vector<1x128xf32>
    %117 = tpu.reciprocal %116 {approx = true} : vector<1x128xf32> -> vector<1x128xf32>
    %118 = arith.mulf %116, %117 : vector<1x128xf32>
    %cst_48 = arith.constant 2.000000e+00 : f32
    %119 = vector.broadcast %cst_48 : f32 to vector<1x128xf32>
    %120 = arith.subf %119, %118 : vector<1x128xf32>
    %121 = arith.mulf %117, %120 : vector<1x128xf32>
    %cst_49 = arith.constant 1.000000e+00 : f32
    %122 = vector.broadcast %cst_49 : f32 to vector<1x128xf32>
    %123 = arith.subf %122, %121 : vector<1x128xf32>
    %cst_50 = arith.constant 1.000000e+00 : f32
    %124 = vector.broadcast %cst_50 : f32 to vector<1x128xf32>
    %125 = arith.mulf %123, %124 : vector<1x128xf32>
    %c0_51 = arith.constant 0 : index
    %c0_52 = arith.constant 0 : index
    %126 = vector.load %arg3[%c0_51, %c0_52] : memref<1x128xf32, #tpu.memory_space<vmem>>, vector<1x128xf32>
    tpu.vector_store %arg3[%c0_51, %c0_52], %125 {strides = array<i32>} : memref<1x128xf32, #tpu.memory_space<vmem>>, vector<1x128xf32>,
    return
  }
  func.func @transform_0(%arg0: i32) -> (i32, i32, i32) {
    %c0_i32 = arith.constant 0 : i32
    %c0_i32_0 = arith.constant 0 : i32
    %c0_i32_1 = arith.constant 0 : i32
    return %c0_i32, %arg0, %c0_i32_0 : i32, i32, i32
  }
  func.func @transform_1(%arg0: i32) -> (i32, i32, i32) {
    %c0_i32 = arith.constant 0 : i32
    %c0_i32_0 = arith.constant 0 : i32
    %c0_i32_1 = arith.constant 0 : i32
    return %c0_i32, %arg0, %c0_i32_0 : i32, i32, i32
  }
  func.func @transform_2(%arg0: i32) -> (i32, i32) {
    %c0_i32 = arith.constant 0 : i32
    %c0_i32_0 = arith.constant 0 : i32
    return %arg0, %c0_i32 : i32, i32
  }
}

</mosaic_0001>

<bundles_post_ra>
// kernel: tpu_custom_call.1
= control target key start
LH: loop header
LB: loop body
LE: loop exit
PB: predicated region body
PF: predicated region fallthrough
CT: control target
= control target key end

     0   :  { %7 = vsyncpa [#allocation3], 0  ;;  %s1166_s0 = inlined_call_operand.hbm [shape: f32[5,1,128], index: 0, kind: input, shape index: {}]   ;;  %s1167_s1 = inlined_call_operand.hbm [shape: f32[5,1,128], index: 1, kind: input, shape index: {}]   ;;  %s1168_s2 = inlined_call_operand.hbm [shape: f32[1,128], index: 2, kind: output, shape index: {}]  }
   0x1   :  { %8 = vsyncpa [#allocation6], 0 }
   0x2   :  { %9 = vsyncpa [#allocation4], 0  ;;  %s14_s11 = sshll.u32 %s1166_s0, 4  ;;  %s911_s12 = smov [#allocation2]   ;;  %s15_s11 = int_to_ptr.hbm [resolvable:$true] %s14_s11 }
   0x3   :  { %s16_s13 = sshll.u32 %s911_s12, 4  ;;  %s27_s16 = sshll.u32 %s1167_s1, 4  ;;  %s17_s13 = int_to_ptr.vmem [resolvable:$true] %s16_s13  ;;  %s28_s16 = int_to_ptr.hbm [resolvable:$true] %s27_s16 }
   0x4   :  { %s912_s17 = smov 16   ;;  %s913_s18 = smov 1  }
   0x5   :  { %22 = dma.hbm_to_vmem [thread:$0]  %s15_s11, 80, %s17_s13, [#allocation3], %s912_s17, %s912_s17, %s913_s18  }
   0x6   :  { %s914_s19 = smov [#allocation5]  }
   0x7   :  { %s29_s20 = sshll.u32 %s914_s19, 4  ;;  %s30_s20 = int_to_ptr.vmem [resolvable:$true] %s29_s20 }
   0x8   :  { %35 = dma.hbm_to_vmem [thread:$0]  %s28_s16, 80, %s30_s20, [#allocation6], %s912_s17, %s912_s17, %s913_s18  }
   0x9   :  { %905 = dma.done.wait [#allocation3], 80  }
   0xa   :  { %906 = vsyncadd [#allocation3], 4294967216 }
   0xb   :  { %907 = dma.done.wait [#allocation6], 80  }
   0xc   :  { %908 = vsyncadd [#allocation6], 4294967216  ;;  %v56_v0 = vld [vmem:[#allocation2 + $0x4] sm:$0x1]  ;;  %v393_v2 = vld [vmem:[#allocation5 + $0x4] sm:$0x1] }
   0xd   :  { %v944_v1 = vadd.f32 %v56_v0, %v56_v0  ;;  %v946_v3 = vadd.f32 %v393_v2, %v393_v2  ;;  %v915_v25 = vmov 683565275   ;;  %v916_v27 = vmov 2475754826   ;;  %s922_s0 = smov [#allocation7]   ;;  %s787_s23 = sshll.u32 %s1168_s2, 4  ;;  %s788_s23 = int_to_ptr.hbm [resolvable:$true] %s787_s23 }
   0xe   :  { %v917_v29 = vmov 2131351028   ;;  %v918_v31 = vmov 2102212464   ;;  %v919_v33 = vmov 920167782  }
   0xf   :  { %v66_v4 = vand.u32 2147483647, %v944_v1  ;;  %v69_v5 = vand.u32 2139095040, %v944_v1  ;;  %v403_v6 = vand.u32 2147483647, %v946_v3  ;;  %v406_v7 = vand.u32 2139095040, %v946_v3 }
  0x10   :  { %v920_v42 = vmov 1326507024   ;;  %s785_s1 = sshll.u32 %s922_s0, 4  ;;  %s786_s1 = int_to_ptr.vmem [resolvable:$true] %s785_s1 }
  0x11   :  { %v70_v8 = vshrl.u32 %v69_v5, 23  ;;  %v73_v9 = vand.u32 8388607, %v66_v4  ;;  %v407_v10 = vshrl.u32 %v406_v7, 23  ;;  %v410_v14 = vand.u32 8388607, %v403_v6 }
  0x13   :  { %v798_v11 = vadd.s32 4294967169, %v70_v8  ;;  %v74_v12 = vor.u32 8388608, %v73_v9  ;;  %v804_v13 = vadd.s32 4294967169, %v407_v10  ;;  %v411_v19 = vor.u32 8388608, %v410_v14 }
  0x15   :  { %v76_v15 = vadd.s32 1, %v798_v11  ;;  %v413_v16 = vadd.s32 1, %v804_v13  ;;  %v956_v18 = vshll.u32 %v74_v12, 8  ;;  %v966_v36 = vshll.u32 %v411_v19, 8 }
  0x17   :  { %vm77_vm0 = vcmp.gt.s32.totalorder %v76_v15, 0  ;;  %vm414_vm1 = vcmp.gt.s32.totalorder %v413_v16, 0  ;;  %v115_v35 = vand.u32 65535, %v956_v18  ;;  %v116_v40 = vshrl.u32 %v956_v18, 16 }
  0x18   :  { %v78_v17 = vsel %vm77_vm0, %v76_v15, 0  ;;  %v415_v21 = vsel %vm414_vm1, %v413_v16, 0 }
  0x19   :  { %v80_v20 = vand.u32 31, %v78_v17  ;;  %v958_v22 = vshrl.u32 %v78_v17, 5  ;;  %v960_v23 = vand.u32 31, %v415_v21  ;;  %v984_v53 = vshrl.u32 %v415_v21, 5 }
  0x1b   :  { %v81_v24 = vsub.s32 32, %v80_v20  ;;  %v83_v26 = vshll.u32 %v915_v25, %v80_v20  ;;  %v86_v28 = vshll.u32 %v916_v27, %v80_v20  ;;  %v89_v30 = vshll.u32 %v917_v29, %v80_v20 }
  0x1c   :  { %v92_v32 = vshll.u32 %v918_v31, %v80_v20  ;;  %v95_v34 = vshll.u32 %v919_v33, %v80_v20  ;;  %vm98_vm2 = vcmp.lt.s32.totalorder %v958_v22, 1  ;;  %vm101_vm3 = vcmp.lt.s32.totalorder %v958_v22, 4 }
  0x1d   :  { %v84_v37 = vshrl.u32 %v916_v27, %v81_v24  ;;  %v87_v38 = vshrl.u32 %v917_v29, %v81_v24  ;;  %v90_v39 = vshrl.u32 %v918_v31, %v81_v24  ;;  %v93_v41 = vshrl.u32 %v919_v33, %v81_v24 }
  0x1e   :  { %v96_v43 = vshrl.u32 %v920_v42, %v81_v24  ;;  %v975_v47 = vsub.s32 32, %v960_v23  ;;  %v82_v48 = vshrl.u32 %v915_v25, %v81_v24  ;;  %vm100_vm4 = vcmp.lt.s32.totalorder %v958_v22, 3 }
  0x1f   :  { %v85_v44 = vor.u32 %v84_v37, %v83_v26  ;;  %v88_v45 = vor.u32 %v87_v38, %v86_v28  ;;  %v91_v46 = vor.u32 %v90_v39, %v89_v30  ;;  %v94_v49 = vor.u32 %v93_v41, %v92_v32 }
  0x20   :  { %v97_v50 = vor.u32 %v96_v43, %v95_v34  ;;  %vm99_vm5 = vcmp.lt.s32.totalorder %v958_v22, 2  ;;  %v420_v56 = vshll.u32 %v915_v25, %v960_v23  ;;  %v423_v57 = vshll.u32 %v916_v27, %v960_v23 }
  0x21   :  { %v106_v51 = vsel %vm98_vm2, %v85_v44, %v88_v45  ;;  %v110_v52 = vsel %vm98_vm2, %v88_v45, %v91_v46  ;;  %v107_v54 = vsel %vm101_vm3, %v94_v49, 920167782  ;;  %v103_v58 = vsel %vm101_vm3, %v91_v46, 2102212464 }
  0x22   :  { %v111_v55 = vsel %vm101_vm3, %v97_v50, 1326507024  ;;  %v108_v59 = vsel %vm100_vm4, %v91_v46, %v107_v54  ;;  %v421_v61 = vshrl.u32 %v916_v27, %v975_v47  ;;  %v102_v62 = vsel %vm98_vm2, %v82_v48, %v85_v44 }
  0x23   :  { %v112_v60 = vsel %vm100_vm4, %v94_v49, %v111_v55  ;;  %v109_v63 = vsel %vm99_vm5, %v106_v51, %v108_v59  ;;  %v424_v2 = vshrl.u32 %v917_v29, %v975_v47  ;;  %v104_v10 = vsel %vm100_vm4, %v88_v45, %v103_v58 }
  0x24   :  { %v113_v0 = vsel %vm99_vm5, %v110_v52, %v112_v60  ;;  %v139_v8 = vand.u32 65535, %v109_v63  ;;  %v140_v9 = vshrl.u32 %v109_v63, 16  ;;  %v1009_v11 = vor.u32 %v421_v61, %v420_v56 }
  0x25   :  { %v117_v5 = vand.u32 65535, %v113_v0  ;;  %v118_v7 = vshrl.u32 %v113_v0, 16  ;;  %v1011_v12 = vor.u32 %v424_v2, %v423_v57  ;;  %v426_v13 = vshll.u32 %v917_v29, %v960_v23 }
  0x26   :  { %v427_v17 = vshrl.u32 %v918_v31, %v975_v47  ;;  %v141_v20 = vmul.u32 %v139_v8, %v115_v35  ;;  %v142_v21 = vmul.u32 %v140_v9, %v115_v35  ;;  %v143_v24 = vmul.u32 %v139_v8, %v116_v40 }
  0x27   :  { %v119_v14 = vmul.u32 %v117_v5, %v115_v35  ;;  %v120_v15 = vmul.u32 %v118_v7, %v115_v35  ;;  %v121_v16 = vmul.u32 %v117_v5, %v116_v40  ;;  %v122_v19 = vmul.u32 %v118_v7, %v116_v40 }
  0x28   :  { %v144_v30 = vmul.u32 %v140_v9, %v116_v40  ;;  %v145_v34 = vshll.u32 %v142_v21, 16  ;;  %v146_v37 = vshrl.u32 %v142_v21, 16  ;;  %v147_v38 = vshll.u32 %v143_v24, 16 }
  0x29   :  { %v123_v26 = vshll.u32 %v120_v15, 16  ;;  %v124_v27 = vshrl.u32 %v120_v15, 16  ;;  %v125_v28 = vshll.u32 %v121_v16, 16  ;;  %v126_v32 = vshrl.u32 %v121_v16, 16 }
  0x2a   :  { %v148_v39 = vshrl.u32 %v143_v24, 16  ;;  %v429_v41 = vshll.u32 %v918_v31, %v960_v23  ;;  %v921_v43 = vmov 0   ;;  %vm149_vm7 = vc.u32 %v141_v20, %v145_v34 }
  0x2b   :  { %vm127_vm6 = vc.u32 %v119_v14, %v123_v26  ;;  %v129_v29 = vadd.s32 %v123_v26, %v119_v14  ;;  %v151_v35 = vadd.s32 %v145_v34, %v141_v20  ;;  %v430_v45 = vshrl.u32 %v919_v33, %v975_v47 }
  0x2c   :  { %v128_v44 = vsel %vm127_vm6, 1, %v921_v43  ;;  %v150_v40 = vsel %vm149_vm7, 1, %v921_v43  ;;  %v432_v48 = vshll.u32 %v919_v33, %v960_v23  ;;  %v1025_v31 = vor.u32 %v427_v17, %v426_v13 }
  0x2d   :  { %v130_v46 = vadd.s32 %v128_v44, %v122_v19  ;;  %vm131_vm8 = vc.u32 %v129_v29, %v125_v28  ;;  %v152_v50 = vadd.s32 %v150_v40, %v144_v30  ;;  %vm153_vm9 = vc.u32 %v151_v35, %v147_v38 }
  0x2e   :  { %v132_v49 = vsel %vm131_vm8, 1, %v921_v43  ;;  %v154_v52 = vsel %vm153_vm9, 1, %v921_v43  ;;  %v431_v54 = vor.u32 %v430_v45, %v429_v41  ;;  %v433_v55 = vshrl.u32 %v920_v42, %v975_v47 }
  0x2f   :  { %v134_v51 = vadd.s32 %v132_v49, %v130_v46  ;;  %v1030_v56 = vadd.s32 %v151_v35, %v147_v38  ;;  %v156_v57 = vadd.s32 %v154_v52, %v152_v50  ;;  %vm435_vm10 = vcmp.lt.s32.totalorder %v984_v53, 1 }
  0x30   :  { %vm437_vm11 = vcmp.lt.s32.totalorder %v984_v53, 3  ;;  %v434_v33 = vor.u32 %v433_v55, %v432_v48  ;;  %vm436_vm12 = vcmp.lt.s32.totalorder %v984_v53, 2  ;;  %vm438_vm13 = vcmp.lt.s32.totalorder %v984_v53, 4 }
  0x31   :  { %v135_v23 = vadd.s32 %v134_v51, %v124_v27  ;;  %v105_v58 = vsel %vm99_vm5, %v102_v62, %v104_v10  ;;  %v157_v59 = vadd.s32 %v156_v57, %v146_v37  ;;  %v443_v42 = vsel %vm435_vm10, %v1009_v11, %v1011_v12 }
  0x32   :  { %v444_v60 = vsel %vm438_vm13, %v431_v54, 920167782  ;;  %v447_v22 = vsel %vm435_vm10, %v1011_v12, %v1025_v31  ;;  %v452_v62 = vand.u32 65535, %v966_v36  ;;  %v448_v5 = vsel %vm438_vm13, %v434_v33, 1326507024 }
  0x33   :  { %v1044_v61 = vadd.s32 %v135_v23, %v126_v32  ;;  %v445_v63 = vsel %vm437_vm11, %v1025_v31, %v444_v60  ;;  %v158_v0 = vadd.s32 %v157_v59, %v148_v39  ;;  %v453_v7 = vshrl.u32 %v966_v36, 16 }
  0x34   :  { %v446_v2 = vsel %vm436_vm12, %v443_v42, %v445_v63  ;;  %v159_v8 = vmul.u32 %v956_v18, %v105_v58  ;;  %v449_v9 = vsel %vm437_vm11, %v431_v54, %v448_v5  ;;  %v419_v35 = vshrl.u32 %v915_v25, %v975_v47 }
  0x35   :  { %vm161_vm14 = vc.u32 %v1044_v61, %v1030_v56  ;;  %v476_v10 = vand.u32 65535, %v446_v2  ;;  %v162_v13 = vadd.s32 1, %v158_v0  ;;  %v450_v14 = vsel %vm436_vm12, %v447_v22, %v449_v9 }
  0x36   :  { %v477_v15 = vshrl.u32 %v446_v2, 16  ;;  %v454_v16 = vand.u32 65535, %v450_v14  ;;  %v455_v17 = vshrl.u32 %v450_v14, 16  ;;  %v440_v47 = vsel %vm438_vm13, %v1025_v31, 2102212464 }
  0x37   :  { %v163_v19 = vsel %vm161_vm14, %v162_v13, %v158_v0  ;;  %v480_v21 = vmul.u32 %v476_v10, %v453_v7  ;;  %v478_v27 = vmul.u32 %v476_v10, %v452_v62  ;;  %v439_v60 = vsel %vm435_vm10, %v419_v35, %v1009_v11  ;;  %v48_v35 = vld [vmem:[#allocation2 + $0x2] sm:$0x1] }
  0x38   :  { %v479_v20 = vmul.u32 %v477_v15, %v452_v62  ;;  %v164_v24 = vadd.s32 %v163_v19, %v159_v8  ;;  %v456_v26 = vmul.u32 %v454_v16, %v452_v62  ;;  %v457_v18 = vmul.u32 %v455_v17, %v452_v62 }
  0x39   :  { %v458_v28 = vmul.u32 %v454_v16, %v453_v7  ;;  %v459_v34 = vmul.u32 %v455_v17, %v453_v7  ;;  %v481_v29 = vmul.u32 %v477_v15, %v453_v7  ;;  %v484_v39 = vshll.u32 %v480_v21, 16 }
  0x3a   :  { %v482_v30 = vshll.u32 %v479_v20, 16  ;;  %v165_v32 = vadd.s32 536870912, %v164_v24  ;;  %v460_v37 = vshll.u32 %v457_v18, 16  ;;  %v461_v49 = vshrl.u32 %v457_v18, 16 }
  0x3b   :  { %v462_v38 = vshll.u32 %v458_v28, 16  ;;  %v483_v52 = vshrl.u32 %v479_v20, 16  ;;  %v463_v57 = vshrl.u32 %v458_v28, 16  ;;  %v485_v33 = vshrl.u32 %v480_v21, 16 }
  0x3c   :  { %v1066_v41 = vshrl.u32 %v165_v32, 30  ;;  %vm464_vm15 = vc.u32 %v456_v26, %v460_v37  ;;  %v466_v44 = vadd.s32 %v460_v37, %v456_v26  ;;  %vm486_vm0 = vc.u32 %v478_v27, %v482_v30 }
  0x3d   :  { %v465_v45 = vsel %vm464_vm15, 1, %v921_v43  ;;  %v487_v46 = vsel %vm486_vm0, 1, %v921_v43  ;;  %v488_v40 = vadd.s32 %v482_v30, %v478_v27  ;;  %v441_v62 = vsel %vm437_vm11, %v1011_v12, %v440_v47 }
  0x3e   :  { %v167_v48 = vshll.u32 %v1066_v41, 30  ;;  %v467_v50 = vadd.s32 %v465_v45, %v459_v34  ;;  %vm468_vm1 = vc.u32 %v466_v44, %v462_v38  ;;  %v489_v54 = vadd.s32 %v487_v46, %v481_v29  ;;  %v389_v45 = vld [vmem:[#allocation5 + $0x3] sm:$0x1] }
  0x3f   :  { %v469_v51 = vsel %vm468_vm1, 1, %v921_v43  ;;  %vm490_vm2 = vc.u32 %v488_v40, %v484_v39  ;;  %v492_v0 = vadd.s32 %v488_v40, %v484_v39  ;;  %v442_v7 = vsel %vm436_vm12, %v439_v60, %v441_v62  ;;  %v385_v39 = vld [vmem:[#allocation5 + $0x2] sm:$0x1] }
  0x40   :  { %v168_v55 = vsub.s32 %v164_v24, %v167_v48  ;;  %v471_v23 = vadd.s32 %v469_v51, %v467_v50  ;;  %v491_v25 = vsel %vm490_vm2, 1, %v921_v43  ;;  %v160_v9 = vadd.s32 %v1030_v56, %v1044_v61  ;;  %v52_v48 = vld [vmem:[#allocation2 + $0x3] sm:$0x1] }
  0x41   :  { %v493_v58 = vadd.s32 %v491_v25, %v489_v54  ;;  %v496_v10 = vmul.u32 %v966_v36, %v442_v7  ;;  %vm68_vm6 = vcmp.lt.s32.totalorder %v944_v1, 0  ;;  %vm1095_vm7 = vcmp.le.f32.partialorder %v66_v4, 0.7853982 }
  0x42   :  { %vm169_vm3 = vcmp.lt.s32.totalorder %v168_v55, 0  ;;  %v170_v59 = vsub.s32 0, %v168_v55  ;;  %v472_v42 = vadd.s32 %v471_v23, %v461_v49  ;;  %v386_v49 = vmax.f32 %v385_v39, 1e-07 }
  0x43   :  { %v494_v63 = vadd.s32 %v493_v58, %v483_v52  ;;  %v390_v51 = vmax.f32 %v389_v45, 1e-07  ;;  %v49_v54 = vmax.f32 %v48_v35, 1e-07  ;;  %v53_v23 = vmax.f32 %v52_v48, 1e-07 }
  0x44   :  { %v171_v22 = vsel %vm169_vm3, %v170_v59, %v168_v55  ;;  %v473_v43 = vadd.s32 %v472_v42, %v463_v57  ;;  %v190_v59 = vsub.s32 4, %v1066_v41  ;;  %v387_v42 = vmin.f32 %v386_v49, 10000000.0 }
  0x45   :  { %v172_v2 = vclz %v171_v22  ;;  %v495_v5 = vadd.s32 %v494_v63, %v485_v33  ;;  %v391_v60 = vmin.f32 %v390_v51, 10000000.0  ;;  %vm405_vm10 = vcmp.lt.s32.totalorder %v946_v3, 0 }
  0x46   :  { %vm498_vm4 = vc.u32 %v473_v43, %v492_v0  ;;  %v497_v52 = vadd.s32 %v492_v0, %v473_v43  ;;  %v191_v7 = vsel %vm68_vm6, %v190_v59, %v1066_v41  ;;  %vm1118_vm11 = vcmp.le.f32.partialorder %v403_v6, 0.7853982 }
  0x47   :  { %v799_v31 = vadd.s32 4294967294, %v172_v2  ;;  %v499_v8 = vadd.s32 1, %v495_v5  ;;  %v396_v39 = vmul.f32 0.25, %v391_v60  ;;  %vm209_vm14 = vweird.f32 %v944_v1 }
  0x49   :  { %vm800_vm5 = vcmp.lt.s32.totalorder %v799_v31, 0  ;;  %v500_v15 = vsel %vm498_vm4, %v499_v8, %v495_v5  ;;  %v50_v5 = vmin.f32 %v49_v54, 10000000.0  ;;  %v716_v8 = vmul.f32 %v391_v60, %v387_v42 }
  0x4a   :  { %v175_v11 = vsel %vm800_vm5, 0, %v799_v31  ;;  %v501_v19 = vadd.s32 %v500_v15, %v496_v10  ;;  %v54_v31 = vmin.f32 %v53_v23, 10000000.0  ;;  %v193_v15 = vsel %vm1095_vm7, 0, %v191_v7 }
  0x4b   :  { %v176_v13 = vsub.s32 32, %v175_v11  ;;  %v177_v14 = vshll.u32 %v168_v55, %v175_v11  ;;  %v180_v12 = vsub.s32 4294967266, %v175_v11 }
  0x4c   :  { %v502_v53 = vadd.s32 536870912, %v501_v19  ;;  %v379_v54 = vmul.f32 %v54_v31, %v50_v5 }
  0x4d   :  { %v178_v16 = vshrl.u32 %v160_v9, %v176_v13  ;;  %v181_v17 = vadd.s32 127, %v180_v12  ;;  %v59_v12 = vmul.f32 0.25, %v54_v31 }
  0x4e   :  { %v1089_v18 = vshrl.u32 %v502_v53, 30 }
  0x4f   :  { %v179_v20 = vor.u32 %v178_v16, %v177_v14  ;;  %v182_v21 = vshll.u32 %v181_v17, 23  ;;  %v57_v14 = vmul.f32 0.25, %v50_v5  ;;  %v1110_v17 = vmul.f32 0.25, %v716_v8  ;;  %v46_v8 = vld [vmem:[#allocation2 + $0x1] sm:$0x1] }
  0x50   :  { %v504_v56 = vshll.u32 %v1089_v18, 30  ;;  %v527_v53 = vsub.s32 4, %v1089_v18  ;;  %v60_v41 = vmul.f32 %v59_v12, %v54_v31  ;;  %v380_v31 = vmul.f32 0.25, %v379_v54 }
  0x51   :  { %v183_v24 = vor.u32 4788187, %v182_v21  ;;  %v186_v26 = vcvt.s32.f32 %v179_v20 }
  0x52   :  { %v505_v36 = vsub.s32 %v501_v19, %v504_v56 }
  0x53   :  { %v184_v27 = vand.u32 2147483647, %v183_v24  ;;  %v1113_v24 = vmul.f32 %v57_v14, %v50_v5 }
  0x54   :  { %vm506_vm8 = vcmp.lt.s32.totalorder %v505_v36, 0  ;;  %v507_v32 = vsub.s32 0, %v505_v36 }
  0x55   :  { %v187_v61 = vmul.f32 %v186_v26, %v184_v27  ;;  %v364_v26 = vadd.s32 3, %v193_v15 }
  0x56   :  { %v508_v38 = vsel %vm506_vm8, %v507_v32, %v505_v36 }
  0x57   :  { %v188_v30 = vxor.u32 2147483648, %v187_v61  ;;  %v509_v44 = vclz %v508_v38  ;;  %v365_v38 = vand.u32 3, %v364_v26 }
  0x59   :  { %v189_v34 = vsel %vm68_vm6, %v188_v30, %v187_v61  ;;  %v805_v40 = vadd.s32 4294967294, %v509_v44  ;;  %v61_v61 = vadd.f32 %v60_v41, %v1113_v24  ;;  %v210_v44 = vand.u32 3, %v193_v15 }
  0x5a   :  { %v192_v37 = vsel %vm1095_vm7, %v944_v1, %v189_v34  ;;  %v528_v34 = vsel %vm405_vm10, %v527_v53, %v1089_v18  ;;  %vm367_vm12 = vcmp.eq.s32.totalorder %v365_v38, 0  ;;  %vm370_vm13 = vcmp.eq.s32.totalorder %v365_v38, 2 }
  0x5b   :  { %v194_v29 = vmul.f32 %v192_v37, %v192_v37  ;;  %vm806_vm9 = vcmp.lt.s32.totalorder %v805_v40, 0  ;;  %v1131_v45 = vmul.f32 0.5, %v61_v61  ;;  %vm212_vm15 = vcmp.eq.s32.totalorder %v210_v44, 0 }
  0x5c   :  { %v512_v57 = vsel %vm806_vm9, 0, %v805_v40  ;;  %vm215_vm0 = vcmp.eq.s32.totalorder %v210_v44, 2  ;;  %vm366_vm1 = vcmp.lt.s32.totalorder %v365_v38, 2  ;;  %vm211_vm2 = vcmp.lt.s32.totalorder %v210_v44, 2 }
  0x5d   :  { %v195_v4 = vmul.f32 -0.001358992, %v194_v29  ;;  %v202_v46 = vmul.f32 -0.00019511016, %v194_v29  ;;  %v513_v47 = vsub.s32 32, %v512_v57  ;;  %v514_v33 = vshll.u32 %v505_v36, %v512_v57 }
  0x5e   :  { %v517_v58 = vsub.s32 4294967266, %v512_v57  ;;  %v1125_v36 = vmul.f32 %v1110_v17, %v1110_v17  ;;  %v44_v57 = vld [vmem:[#allocation2] sm:$0x1]  ;;  %vm546_vm9 = vweird.f32 %v946_v3 }
  0x5f   :  { %v203_v50 = vadd.f32 0.008332121, %v202_v46  ;;  %v196_v55 = vadd.f32 0.041655596, %v195_v4  ;;  %v515_v63 = vshrl.u32 %v497_v52, %v513_v47  ;;  %v63_v4 = vsub.f32 %v1113_v24, %v60_v41  ;;  %v381_v47 = vld [vmem:[#allocation5] sm:$0x1] }
  0x60   :  { %v518_v2 = vadd.s32 127, %v517_v58  ;;  %v530_v46 = vsel %vm1118_vm11, 0, %v528_v34  ;;  %823 = vrcp.f32 %v1125_v36  ;;  %v718_v7 = vsub.f32 %v44_v57, %v381_v47 }
  0x61   :  { %v204_v25 = vmul.f32 %v203_v50, %v194_v29  ;;  %v197_v22 = vmul.f32 %v196_v55, %v194_v29  ;;  %v516_v43 = vor.u32 %v515_v63, %v514_v33  ;;  %v397_v50 = vmul.f32 %v396_v39, %v391_v60 }
  0x62   :  { %v519_v0 = vshll.u32 %v518_v2, 23  ;;  %v701_v55 = vadd.s32 3, %v530_v46  ;;  %v547_v63 = vand.u32 3, %v530_v46  ;;  %825 = vlog2.f32 %v1110_v17 }
  0x63   :  { %v205_v62 = vadd.f32 -0.16666654, %v204_v25  ;;  %v198_v9 = vadd.f32 -0.4999988, %v197_v22  ;;  %v523_v13 = vcvt.s32.f32 %v516_v43  ;;  %v64_v14 = vmul.f32 0.5, %v63_v4 }
  0x64   :  { %v520_v10 = vor.u32 4788187, %v519_v0  ;;  %v702_v0 = vand.u32 3, %v701_v55  ;;  %vm552_vm3 = vcmp.eq.s32.totalorder %v547_v63, 2  ;;  %v723_v24 = vmul.f32 2.0, %v718_v7 }
  0x65   :  { %v206_v11 = vmul.f32 %v205_v62, %v194_v29  ;;  %v199_v19 = vmul.f32 %v198_v9, %v194_v29  ;;  %v394_v29 = vmul.f32 0.25, %v387_v42  ;;  %v383_v9 = vld [vmem:[#allocation5 + $0x1] sm:$0x1]  ;;  %827 = vlog2.f32 %v380_v31 }
  0x66   :  { %v521_v16 = vand.u32 2147483647, %v520_v10  ;;  %v1138_v59 = vpop.eup %823  ;;  %vm707_vm4 = vcmp.eq.s32.totalorder %v702_v0, 2  ;;  %v719_v53 = vsub.f32 %v46_v8, %v383_v9  ;;  %vm548_vm5 = vcmp.lt.s32.totalorder %v547_v63, 2 }
  0x67   :  { %v207_v20 = vadd.f32 1.0, %v206_v11  ;;  %v200_v28 = vadd.f32 1.0, %v199_v19  ;;  %v395_v49 = vmul.f32 %v394_v29, %v387_v42  ;;  %vm549_vm6 = vcmp.eq.s32.totalorder %v547_v63, 0 }
  0x68   :  { %v524_v21 = vmul.f32 %v523_v13, %v521_v16  ;;  %v744_v13 = vmul.f32 %v1138_v59, %v1125_v36  ;;  %vm704_vm7 = vcmp.eq.s32.totalorder %v702_v0, 0  ;;  %v826_v61 = vpop.eup %825  ;;  %vm703_vm8 = vcmp.lt.s32.totalorder %v702_v0, 2 }
  0x69   :  { %v208_v30 = vmul.f32 %v207_v20, %v192_v37  ;;  %v216_v18 = vxor.u32 2147483648, %v200_v28  ;;  %v398_v42 = vadd.f32 %v397_v50, %v395_v49  ;;  %v400_v60 = vsub.f32 %v395_v49, %v397_v50 }
  0x6a   :  { %v525_v56 = vxor.u32 2147483648, %v524_v21  ;;  %v745_v27 = vsub.f32 1.0, %v744_v13  ;;  %v721_v38 = vmul.f32 %v718_v7, %v718_v7  ;;  %v724_v29 = vmul.f32 %v723_v24, %v719_v53 }
  0x6b   :  { %v213_v37 = vxor.u32 2147483648, %v208_v30  ;;  %v372_v25 = vsel %vm370_vm13, %v216_v18, %v208_v30  ;;  %v217_v62 = vsel %vm215_vm0, %v216_v18, %v208_v30  ;;  %v399_v15 = vmul.f32 0.5, %v398_v42 }
  0x6c   :  { %v526_v32 = vsel %vm405_vm10, %v525_v56, %v524_v21  ;;  %v401_v16 = vmul.f32 0.5, %v400_v60  ;;  %v746_v44 = vmul.f32 %v1138_v59, %v745_v27  ;;  %v737_v18 = vmul.f32 0.6931472, %v826_v61 }
  0x6d   :  { %v529_v6 = vsel %vm1118_vm11, %v946_v3, %v526_v32  ;;  %v369_v23 = vsel %vm367_vm12, %v200_v28, %v213_v37  ;;  %v214_v22 = vsel %vm212_vm15, %v200_v28, %v213_v37  ;;  %vm748_vm10 = vweird.f32 %v1125_v36 }
  0x6e   :  { %v531_v35 = vmul.f32 %v529_v6, %v529_v6  ;;  %v373_v5 = vsel %vm366_vm1, %v369_v23, %v372_v25  ;;  %v218_v12 = vsel %vm211_vm2, %v214_v22, %v217_v62  ;;  %vm749_vm11 = vweird.f32 %v1138_v59 }
  0x6f   :  { %v374_v19 = vsel %vm209_vm14, nan, %v373_v5  ;;  %v219_v17 = vsel %vm209_vm14, nan, %v218_v12  ;;  %v747_v54 = vadd.f32 %v1138_v59, %v746_v44  ;;  %v752_v55 = vand.u32 2147483647, %v1125_v36  ;;  %vm750_vm12 = vmor %vm748_vm10, %vm749_vm11 }
  0x70   :  { %v532_v40 = vmul.f32 -0.001358992, %v531_v35  ;;  %v539_v48 = vmul.f32 -0.00019511016, %v531_v35  ;;  %v377_v56 = vmul.f32 %v374_v19, %v64_v14  ;;  %v375_v34 = vmul.f32 %v219_v17, %v64_v14 }
  0x71   :  { %v754_v57 = vand.u32 2147483648, %v1125_v36  ;;  %vm753_vm13 = vcmp.eq.f32.partialorder %v752_v55, 8.507059e+37 }
  0x72   :  { %v533_v51 = vadd.f32 0.041655596, %v532_v40  ;;  %v540_v52 = vadd.f32 0.008332121, %v539_v48  ;;  %v731_v37 = vmul.f32 2.0, %v377_v56  ;;  %v376_v3 = vadd.f32 %v375_v34, %v1131_v45 }
  0x73   :  { %v378_v49 = vsub.f32 %v1131_v45, %v375_v34  ;;  %v755_v45 = vor.u32 1.1754944e-38, %v754_v57 }
  0x74   :  { %v534_v33 = vmul.f32 %v533_v51, %v531_v35  ;;  %v541_v58 = vmul.f32 %v540_v52, %v531_v35 }
  0x76   :  { %v535_v2 = vadd.f32 -0.4999988, %v534_v33  ;;  %v542_v43 = vadd.f32 -0.16666654, %v541_v58 }
  0x78   :  { %v536_v11 = vmul.f32 %v535_v2, %v531_v35  ;;  %v543_v10 = vmul.f32 %v542_v43, %v531_v35  ;;  %v828_v35 = vpop.eup %827  ;;  %v751_v43 = vsel %vm750_vm12, %v1138_v59, %v747_v54 }
  0x79   :  { %v739_v52 = vmul.f32 0.6931472, %v828_v35  ;;  %v756_v0 = vsel %vm753_vm13, %v755_v45, %v751_v43 }
  0x7a   :  { %v537_v20 = vadd.f32 1.0, %v536_v11  ;;  %v544_v21 = vadd.f32 1.0, %v543_v10 }
  0x7b   :  { %v740_v22 = vsub.f32 %v737_v18, %v739_v52 }
  0x7c   :  { %v545_v41 = vmul.f32 %v544_v21, %v529_v6  ;;  %v553_v26 = vxor.u32 2147483648, %v537_v20  ;;  %v727_v6 = vmul.f32 %v719_v53, %v719_v53 }
  0x7d   :  { %v741_v36 = vmul.f32 2.0, %v740_v22 }
  0x7e   :  { %v550_v28 = vxor.u32 2147483648, %v545_v41  ;;  %v554_v30 = vsel %vm552_vm3, %v553_v26, %v545_v41  ;;  %v709_v32 = vsel %vm707_vm4, %v553_v26, %v545_v41 }
  0x80   :  { %v551_v1 = vsel %vm549_vm6, %v537_v20, %v550_v28  ;;  %v706_v39 = vsel %vm704_vm7, %v537_v20, %v550_v28 }
  0x81   :  { %v555_v4 = vsel %vm548_vm5, %v551_v1, %v554_v30  ;;  %v710_v46 = vsel %vm703_vm8, %v706_v39, %v709_v32 }
  0x82   :  { %v556_v40 = vsel %vm546_vm9, nan, %v555_v4  ;;  %v711_v48 = vsel %vm546_vm9, nan, %v710_v46 }
  0x83   :  { %v712_v50 = vmul.f32 %v556_v40, %v401_v16  ;;  %v714_v51 = vmul.f32 %v711_v48, %v401_v16 }
  0x85   :  { %v713_v23 = vadd.f32 %v712_v50, %v399_v15  ;;  %v715_v25 = vsub.f32 %v399_v15, %v712_v50  ;;  %v725_v47 = vmul.f32 %v724_v29, %v714_v51  ;;  %v732_v33 = vmul.f32 %v731_v37, %v714_v51 }
  0x87   :  { %v722_v58 = vmul.f32 %v721_v38, %v715_v25  ;;  %v728_v42 = vmul.f32 %v727_v6, %v713_v23  ;;  %v730_v60 = vmul.f32 %v715_v25, %v376_v3  ;;  %v734_v63 = vmul.f32 %v713_v23, %v378_v49 }
  0x89   :  { %v726_v62 = vsub.f32 %v722_v58, %v725_v47  ;;  %v733_v2 = vsub.f32 %v730_v60, %v732_v33 }
  0x8b   :  { %v729_v5 = vadd.f32 %v728_v42, %v726_v62  ;;  %v735_v31 = vadd.f32 %v734_v63, %v733_v2 }
  0x8d   :  { %v742_v7 = vadd.f32 %v735_v31, %v729_v5 }
  0x8f   :  { %v757_v8 = vmul.f32 %v756_v0, %v742_v7 }
  0x91   :  { %v758_v9 = vadd.f32 %v757_v8, %v741_v36 }
  0x93   :  { %v810_v11 = vadd.f32 -2.0, %v758_v9 }
  0x95   :  { %v760_v10 = vmax.f32 %v810_v11, 1e-06 }
  0x97   :  { %829 = vrsqrt.f32 %v760_v10  ;;  %vm768_vm14 = vcmp.eq.f32.partialorder %v760_v10, inf  ;;  %v771_v20 = vand.u32 2147483648, %v760_v10  ;;  %vm770_vm15 = vcmp.eq.f32.partialorder %v760_v10, 0.0 }
  0x9d   :  { %v830_v13 = vpop.eup %829 }
  0x9e   :  { %v762_v14 = vmul.f32 %v830_v13, %v760_v10 }
  0xa0   :  { %v763_v12 = vmul.f32 %v830_v13, %v762_v14 }
  0xa2   :  { %v764_v15 = vmul.f32 0.5, %v763_v12 }
  0xa4   :  { %v765_v16 = vsub.f32 1.5, %v764_v15 }
  0xa6   :  { %v766_v19 = vmul.f32 %v830_v13, %v765_v16 }
  0xa8   :  { %v767_v59 = vmul.f32 %v766_v19, %v760_v10 }
  0xaa   :  { %v769_v21 = vsel %vm768_vm14, %v760_v10, %v767_v59 }
  0xab   :  { %v772_v53 = vsel %vm770_vm15, %v771_v20, %v769_v21 }
  0xac   :  { %v773_v24 = vadd.f32 1.0, %v772_v53 }
  0xae   :  { %831 = vrcp.f32 %v773_v24 }
  0xb4   :  { %v832_v17 = vpop.eup %831 }
  0xb5   :  { %v775_v41 = vmul.f32 %v832_v17, %v773_v24 }
  0xb7   :  { %v776_v26 = vsub.f32 2.0, %v775_v41 }
  0xb9   :  { %v777_v27 = vmul.f32 %v832_v17, %v776_v26 }
  0xbb   :  { %v778_v56 = vsub.f32 1.0, %v777_v27 }
  0xbd   :  { %779 = vst [vmem:[#allocation7] sm:$0x1] %v778_v56 }
  0xbe   :  { %790 = dma.vmem_to_hbm [thread:$0]  %s786_s1, 16, %s788_s23, [#allocation4]  }
  0xbf   :  { %909 = dma.done.wait [#allocation4], 16  }
  0xc0   :  { %910 = vsyncadd [#allocation4], 4294967280 }
  0xc1   :  { %795 = vsyncpa [#allocation3], 1 }
  0xc2   :  { %796 = vsyncpa [#allocation6], 1 }
  0xc3   :  { %797 = vsyncpa [#allocation4], 1 }

</bundles_post_ra>
